<compile_context>
chip_gen: v7x
topology: tpu7x:2x2x1
jax: 0.10.0
libtpu: 0.0.40
codegen_flags: <defaults>
</compile_context>

<pallas_src>
import functools

import jax
import jax.numpy as jnp
from jax.experimental import pallas as pl
from jax.experimental.pallas import tpu as pltpu


_LANES = 128
_MIN_TILE_ROWS = 512      # >=512-row tiles measure ~85% of HBM roofline.
_MAX_TILE_ROWS = 8192     # 4 MiB f32 / 2 MiB bf16 per block.
_FAST_PATH_BYTES = 256 * 1024


def _round_up(x: int, m: int) -> int:
    return ((x + m - 1) // m) * m


def _sublanes_for(dtype) -> int:
    # Sub-32-bit dtypes pack rows along sublanes: native row tiles are
    # 8 (4-byte), 16 (2-byte), 32 (1-byte).
    itemsize = jnp.dtype(dtype).itemsize
    return max(8, 32 // max(itemsize, 1))


def _softstep_kernel(x_ref, o_ref, *, k: float):
    # sigmoid(k*x) = 0.5 * (tanh(0.5*k*x) + 1): one EUP transcendental per
    # element plus a few VPU ops; k folds into the multiply constant.
    # Compute in f32 (free here: HBM-bound) and cast on the store.
    x = x_ref[...].astype(jnp.float32)
    o_ref[...] = (0.5 * (jnp.tanh((0.5 * k) * x) + 1.0)).astype(o_ref.dtype)


def soft_step(x: jax.Array, *, k: float = 1.0, force_pallas: bool = False) -> jax.Array:
    orig_shape = x.shape
    dtype = x.dtype
    n = x.size
    itemsize = jnp.dtype(dtype).itemsize

    if n == 0:
        return x

    # Tiny tensors: a fused XLA elementwise op beats kernel launch overhead.
    if not force_pallas and n * itemsize < _FAST_PATH_BYTES:
        return jax.nn.sigmoid(jnp.asarray(k, dtype) * x).astype(dtype)

    sublanes = _sublanes_for(dtype)
    rows = pl.cdiv(n, _LANES)

    # Tile heuristic: ~8 grid steps (full prefetch/compute/writeback overlap,
    # >=4 blocks per v7x TensorCore), blocks clamped to [512, 8192] rows.
    if rows <= _MIN_TILE_ROWS:
        tile_rows = _round_up(rows, sublanes)
    else:
        tile_rows = _round_up(pl.cdiv(rows, 8), sublanes)
        tile_rows = max(_MIN_TILE_ROWS, min(tile_rows, _MAX_TILE_ROWS))

    num_blocks = pl.cdiv(rows, tile_rows)
    if num_blocks > 1 and num_blocks % 2 == 1:
        # Prefer an even block count so v7x's two TensorCores split evenly.
        alt = max(_round_up(pl.cdiv(rows, num_blocks + 1), sublanes), sublanes)
        if pl.cdiv(rows, alt) % 2 == 0:
            tile_rows = alt
            num_blocks = pl.cdiv(rows, alt)

    # Pad only to the 128-lane boundary (<=127 elements); skip when exact.
    padded_n = rows * _LANES
    x_flat = x.reshape(-1)
    if padded_n != n:
        x_flat = jnp.pad(x_flat, (0, padded_n - n))
    x2d = x_flat.reshape(rows, _LANES)

    out2d = pl.pallas_call(
        functools.partial(_softstep_kernel, k=float(k)),
        out_shape=jax.ShapeDtypeStruct((rows, _LANES), dtype),
        grid=(num_blocks,),
        in_specs=[pl.BlockSpec((tile_rows, _LANES), lambda i: (i, 0))],
        out_specs=pl.BlockSpec((tile_rows, _LANES), lambda i: (i, 0)),
        compiler_params=pltpu.CompilerParams(
            dimension_semantics=("parallel",),
            # 2x double-buffered (in + out) 4 MiB blocks = 16 MiB; 32 MiB is
            # safe on every generation (v7x physical VMEM/TC = 64 MiB).
            vmem_limit_bytes=32 * 1024 * 1024,
        ),
        cost_estimate=pl.CostEstimate(
            flops=3 * n,
            transcendentals=n,
            bytes_accessed=2 * n * itemsize,
        ),
    )(x2d)

    out_flat = out2d.reshape(-1)
    if padded_n != n:
        out_flat = out_flat[:n]
    return out_flat.reshape(orig_shape)


if __name__ == "__main__":
    key = jax.random.PRNGKey(0)
    # Module forward works on any tensor; use NCHW (2, 4, 16, 16).
    x = jax.random.normal(key, (2, 4, 16, 16), dtype=jnp.float32)
    k = 1.0

    # Exercise the Pallas kernel path explicitly (input is below the
    # fast-path threshold, which would otherwise route to plain XLA).
    out = soft_step(x, k=k, force_pallas=True)
    jax.block_until_ready(out)

    # Reference check against plain JAX.
    ref = 1.0 / (1.0 + jnp.exp(-k * x))
    assert out.shape == x.shape and out.dtype == x.dtype
    assert jnp.max(jnp.abs(out - ref)) < 1e-5

    # Tiny-input fast path (fused XLA sigmoid) also matches.
    out_fast = soft_step(x, k=k)
    jax.block_until_ready(out_fast)
    assert jnp.max(jnp.abs(out_fast - ref)) < 1e-5

    print("KERNEL_OK")
</pallas_src>

<mosaic_0001>
module attributes {stable_mosaic.version = 11 : i64} {
  func.func @_softstep_kernel(%arg0: i32, %arg1: memref<16x128xf32, #tpu.memory_space<vmem>>, %arg2: memref<16x128xf32, #tpu.memory_space<vmem>>) attributes {dimension_semantics = [#tpu.dimension_semantics<parallel>], iteration_bounds = array<i64: 1>, scalar_prefetch = 0 : i64, scratch_operands = 0 : i64, tpu.core_type = #tpu.core_type<tc>, window_params = [{transform_indices = @transform_0, window_bounds = array<i64: 16, 128>}, {transform_indices = @transform_1, window_bounds = array<i64: 16, 128>}]} {
    %c0 = arith.constant 0 : index
    %c0_0 = arith.constant 0 : index
    %0 = vector.load %arg1[%c0, %c0_0] : memref<16x128xf32, #tpu.memory_space<vmem>>, vector<16x128xf32>
    %cst = arith.constant 5.000000e-01 : f32
    %1 = vector.broadcast %cst : f32 to vector<16x128xf32>
    %2 = arith.mulf %1, %0 : vector<16x128xf32>
    %3 = math.tanh %2 : vector<16x128xf32>
    %cst_1 = arith.constant 1.000000e+00 : f32
    %4 = vector.broadcast %cst_1 : f32 to vector<16x128xf32>
    %5 = arith.addf %3, %4 : vector<16x128xf32>
    %cst_2 = arith.constant 5.000000e-01 : f32
    %6 = vector.broadcast %cst_2 : f32 to vector<16x128xf32>
    %7 = arith.mulf %6, %5 : vector<16x128xf32>
    %c0_3 = arith.constant 0 : index
    %c0_4 = arith.constant 0 : index
    %8 = vector.load %arg2[%c0_3, %c0_4] : memref<16x128xf32, #tpu.memory_space<vmem>>, vector<16x128xf32>
    tpu.vector_store %arg2[%c0_3, %c0_4], %7 {strides = array<i32>} : memref<16x128xf32, #tpu.memory_space<vmem>>, vector<16x128xf32>,
    return
  }
  func.func @transform_0(%arg0: i32) -> (i32, i32) {
    %c0_i32 = arith.constant 0 : i32
    %c0_i32_0 = arith.constant 0 : i32
    return %arg0, %c0_i32 : i32, i32
  }
  func.func @transform_1(%arg0: i32) -> (i32, i32) {
    %c0_i32 = arith.constant 0 : i32
    %c0_i32_0 = arith.constant 0 : i32
    return %arg0, %c0_i32 : i32, i32
  }
}

</mosaic_0001>

<bundles_post_ra>
// kernel: tpu_custom_call.1
= control target key start
LH: loop header
LB: loop body
LE: loop exit
PB: predicated region body
PF: predicated region fallthrough
CT: control target
= control target key end

     0   :  { %6 = vsyncpa [#allocation3], 0  ;;  %s152_s0 = inlined_call_operand.hbm [shape: f32[16,128], index: 0, kind: input, shape index: {}]   ;;  %s153_s1 = inlined_call_operand.hbm [shape: f32[16,128], index: 1, kind: output, shape index: {}]  }
   0x1   :  { %7 = vsyncpa [#allocation4], 0  ;;  %s108_s6 = smov [#allocation2]   ;;  %s60_s10 = scalar_lea.hbm %s152_s0, 256 }
   0x2   :  { %s13_s7 = sshll.u32 %s108_s6, 4  ;;  %p61_p0 = scmp.ne.s32.totalorder %s152_s0, %s60_s10  ;;  %s14_s7 = int_to_ptr.vmem [resolvable:$true] %s13_s7 }
   0x3   :  { %p64_p1 = scmp.lt.u32.totalorder %s60_s10, %s152_s0 }
   0x5   :  { %p66_p2 = pnand %p64_p1, %p61_p0 }
   0x7   :  { %69 = shalt.err (!%p66_p2)
}
   0x8   :  { %s70_s15 = scalar_lea.vmem %s14_s7, 256  ;;  %p75_p4 = scmp.lt.s32.totalorder %s14_s7, %s14_s7 }
   0x9   :  { %p71_p3 = scmp.ne.s32.totalorder %s14_s7, %s70_s15  ;;  %p76_p5 = scmp.lt.s32.totalorder %s70_s15, %s70_s15 }
   0xb   :  { %p77_p6 = por %p76_p5, %p75_p4 }
   0xd   :  { %p78_p7 = pnand %p77_p6, %p71_p3 }
   0xf   :  { %81 = shalt.err (!%p78_p7)
}
  0x10   :  { %s109_s16 = smov 128   ;;  %s110_s17 = smov 8  }
  0x11   :  { %19 = dma.hbm_to_vmem [thread:$0]  %s152_s0, 256, %s14_s7, [#allocation3], %s109_s16, %s109_s16, %s110_s17  }
  0x12   :  { %104 = dma.done.wait [#allocation3], 256  }
  0x13   :  { %105 = vsyncadd [#allocation3], 4294967040  ;;  %v23_v0 = vld [vmem:[#allocation2] sm:$0xff]  ;;  %v24_v1 = vld [vmem:[#allocation2 + $0x8] sm:$0xff]  ;;  %s111_s20 = smov [#allocation5]  }
  0x14   :  { %v25_v2 = vmul.f32 0.5, %v23_v0  ;;  %v26_v3 = vmul.f32 0.5, %v24_v1  ;;  %s40_s21 = sshll.u32 %s111_s20, 4  ;;  %s41_s21 = int_to_ptr.vmem [resolvable:$true] %s40_s21 }
  0x15   :  { %s82_s0 = scalar_lea.vmem %s41_s21, 256  ;;  %p87_p9 = scmp.lt.s32.totalorder %s41_s21, %s41_s21 }
  0x16   :  { %56 = vtanh.f32 %v25_v2  ;;  %p83_p8 = scmp.ne.s32.totalorder %s41_s21, %s82_s0  ;;  %p88_p10 = scmp.lt.s32.totalorder %s82_s0, %s82_s0 }
  0x17   :  { %58 = vtanh.f32 %v26_v3 }
  0x18   :  { %p89_p11 = por %p88_p10, %p87_p9 }
  0x1a   :  { %p90_p12 = pnand %p89_p11, %p83_p8 }
  0x20   :  { %v57_v4 = vpop.eup %56 }
  0x21   :  { %v59_v5 = vpop.eup %58  ;;  %v29_v6 = vadd.f32 1.0, %v57_v4 }
  0x22   :  { %v30_v7 = vadd.f32 1.0, %v59_v5 }
  0x23   :  { %v31_v8 = vmul.f32 0.5, %v29_v6 }
  0x24   :  { %v32_v9 = vmul.f32 0.5, %v30_v7 }
  0x25   :  { %33 = vst [vmem:[#allocation5] sm:$0xff] %v31_v8 }
  0x26   :  { %34 = vst [vmem:[#allocation5 + $0x8] sm:$0xff] %v32_v9 }
  0x27   :  { %93 = shalt.err (!%p90_p12)
}
  0x28   :  { %s94_s24 = scalar_lea.hbm %s153_s1, 256 }
  0x29   :  { %p95_p13 = scmp.ne.s32.totalorder %s153_s1, %s94_s24  ;;  %p98_p0 = scmp.lt.u32.totalorder %s94_s24, %s153_s1 }
  0x2b   :  { %p100_p1 = pnand %p98_p0, %p95_p13 }
  0x2d   :  { %103 = shalt.err (!%p100_p1)
}
  0x2e   :  { %46 = dma.vmem_to_hbm [thread:$0]  %s41_s21, 256, %s153_s1, [#allocation4], %s109_s16, %s109_s16, %s110_s17  }
  0x2f   :  { %106 = dma.done.wait [#allocation4], 256  }
  0x30   :  { %107 = vsyncadd [#allocation4], 4294967040 }
  0x31   :  { %50 = vsyncpa [#allocation3], 1 }
  0x32   :  { %51 = vsyncpa [#allocation4], 1 }

</bundles_post_ra>
